<compile_context>
chip_gen: v7x
topology: tpu7x:2x2x1
jax: 0.10.0
libtpu: 0.0.40
codegen_flags: <defaults>
</compile_context>

<pallas_src>
import functools

import jax
import jax.numpy as jnp
from jax.experimental import pallas as pl
from jax.experimental.pallas import tpu as pltpu


def _recursive_filter_kernel(x_ref, o_ref, state_ref, *, w, nt):
    """One (Bt, Nt, HW) tile of the recursion.

    x_ref, o_ref : (Bt, Nt, HW) input / output blocks.
    state_ref    : (Bt, HW) f32 scratch carrying the last output slice of the
                   previous n-block (inner grid axis).
    """
    w32 = jnp.float32(w)
    j = pl.program_id(1)  # block index along the recursion axis

    # First slice of this block: either the very first recursion step
    # (out = x) or a normal update against the carried state.
    x0 = x_ref[:, 0, :].astype(jnp.float32)
    carried = state_ref[...]
    state = jnp.where(j == 0, x0, w32 * x0 + (1.0 - w32) * carried)
    o_ref[:, 0, :] = state.astype(o_ref.dtype)

    # Remaining slices: statically unrolled; state stays in vregs.
    for i in range(1, nt):
        xi = x_ref[:, i, :].astype(jnp.float32)
        state = w32 * xi + (1.0 - w32) * state
        o_ref[:, i, :] = state.astype(o_ref.dtype)

    # Hand the state to the next n-block of this batch block.
    state_ref[...] = state


def recursive_filter(x, w=0.8):
    """x: (bs, c, n, h, w) -> same shape/dtype, EMA along axis 2."""
    bs, c, n, h, wd = x.shape
    B, HW = bs * c, h * wd
    xf = x.reshape(B, n, HW)  # free, contiguous reshape; HW is the lane axis
    itemsize = xf.dtype.itemsize

    # ---- block sizing ----------------------------------------------------
    # Bt: batch rows per block.  Keep the carried f32 state (Bt, HW) under
    # ~64 KiB so it lives in vector registers across the unrolled loop, and
    # make it a multiple of 8 for sublane density.
    state_budget = 64 * 1024
    bt = max(1, min(B, state_budget // max(1, HW * 4)))
    if bt >= 8:
        bt -= bt % 8

    # v7x has 2 TensorCores: keep >=2 blocks along the "parallel" batch axis
    # when there is enough work to be worth sharding (skip for tiny problems
    # where per-step overhead dominates, e.g. the test shape).
    total_bytes = B * n * HW * itemsize
    if bt >= B and B >= 2 and total_bytes >= (1 << 20):
        bt = max(1, B // 2)
        if bt >= 8:
            bt -= bt % 8

    # Nt: recursion steps per block.  Target ~2 MiB blocks so grid overhead
    # is amortized and DMAs run near the HBM roofline, while double-buffered
    # in + out blocks stay far below every generation's VMEM limit.
    target_block_bytes = 2 * 1024 * 1024
    row_bytes = bt * HW * itemsize
    if n * row_bytes <= target_block_bytes:
        nt = n
    else:
        nt = min(n, max(8, (target_block_bytes // row_bytes) // 8 * 8))

    block_bytes = bt * nt * HW * itemsize
    vmem_limit = min(64 * 1024 * 1024,
                     max(32 * 1024 * 1024, 5 * block_bytes + (2 << 20)))

    kernel = functools.partial(_recursive_filter_kernel, w=float(w), nt=nt)

    out = pl.pallas_call(
        kernel,
        out_shape=jax.ShapeDtypeStruct(xf.shape, xf.dtype),
        grid=(pl.cdiv(B, bt), pl.cdiv(n, nt)),  # (batch blocks, recursion blocks)
        in_specs=[pl.BlockSpec((bt, nt, HW), lambda b, j: (b, j, 0))],
        out_specs=pl.BlockSpec((bt, nt, HW), lambda b, j: (b, j, 0)),
        scratch_shapes=[pltpu.VMEM((bt, HW), jnp.float32)],  # carried state
        compiler_params=pltpu.CompilerParams(
            dimension_semantics=("parallel", "arbitrary"),
            vmem_limit_bytes=int(vmem_limit),
        ),
    )(xf)

    return out.reshape(bs, c, n, h, wd)


def _reference(x, w=0.8):
    outs = [x[:, :, 0]]
    for i in range(1, x.shape[2]):
        outs.append(w * x[:, :, i] + (1.0 - w) * outs[-1])
    return jnp.stack(outs, axis=2)


if __name__ == "__main__":
    key = jax.random.PRNGKey(0)
    # (bs, c, n, h, w) — small shapes consistent with the module's forward.
    x = jax.random.normal(key, (2, 4, 8, 16, 16), dtype=jnp.float32)

    y = recursive_filter(x, w=0.8)
    jax.block_until_ready(y)

    y_ref = _reference(x, w=0.8)
    max_err = float(jnp.max(jnp.abs(y - y_ref)))
    assert max_err < 1e-5, f"mismatch vs reference: {max_err}"

    print("KERNEL_OK")
</pallas_src>

<mosaic_0001>
module attributes {stable_mosaic.version = 11 : i64} {
  func.func @_recursive_filter_kernel(%arg0: i32, %arg1: i32, %arg2: memref<8x8x256xf32, #tpu.memory_space<vmem>>, %arg3: memref<8x8x256xf32, #tpu.memory_space<vmem>>, %arg4: memref<8x256xf32, #tpu.memory_space<vmem>>) attributes {dimension_semantics = [#tpu.dimension_semantics<parallel>, #tpu.dimension_semantics<arbitrary>], iteration_bounds = array<i64: 1, 1>, scalar_prefetch = 0 : i64, scratch_operands = 1 : i64, tpu.core_type = #tpu.core_type<tc>, window_params = [{transform_indices = @transform_0, window_bounds = array<i64: 8, 8, 256>}, {transform_indices = @transform_1, window_bounds = array<i64: 8, 8, 256>}]} {
    %c0 = arith.constant 0 : index
    %c0_0 = arith.constant 0 : index
    %c0_1 = arith.constant 0 : index
    %0 = vector.load %arg2[%c0, %c0_0, %c0_1] : memref<8x8x256xf32, #tpu.memory_space<vmem>>, vector<8x1x256xf32>
    %1 = vector.shape_cast %0 : vector<8x1x256xf32> to vector<8x256xf32>
    %c0_2 = arith.constant 0 : index
    %c0_3 = arith.constant 0 : index
    %2 = vector.load %arg4[%c0_2, %c0_3] : memref<8x256xf32, #tpu.memory_space<vmem>>, vector<8x256xf32>
    %c0_i32 = arith.constant 0 : i32
    %3 = arith.cmpi eq, %arg1, %c0_i32 : i32
    %cst = arith.constant 8.000000e-01 : f32
    %4 = vector.broadcast %cst : f32 to vector<8x256xf32>
    %5 = arith.mulf %4, %1 : vector<8x256xf32>
    %cst_4 = arith.constant 1.000000e+00 : f32
    %cst_5 = arith.constant 8.000000e-01 : f32
    %6 = arith.subf %cst_4, %cst_5 : f32
    %7 = vector.broadcast %6 : f32 to vector<8x256xf32>
    %8 = arith.mulf %7, %2 : vector<8x256xf32>
    %9 = arith.addf %5, %8 : vector<8x256xf32>
    %10 = arith.select %3, %1, %9 : vector<8x256xf32>
    %c0_6 = arith.constant 0 : index
    %c0_7 = arith.constant 0 : index
    %c0_8 = arith.constant 0 : index
    %11 = vector.load %arg3[%c0_6, %c0_7, %c0_8] : memref<8x8x256xf32, #tpu.memory_space<vmem>>, vector<8x1x256xf32>
    %12 = vector.shape_cast %11 : vector<8x1x256xf32> to vector<8x256xf32>
    %13 = vector.shape_cast %10 : vector<8x256xf32> to vector<8x1x256xf32>
    tpu.vector_store %arg3[%c0_6, %c0_7, %c0_8], %13 {strides = array<i32>} : memref<8x8x256xf32, #tpu.memory_space<vmem>>, vector<8x1x256xf32>,
    %c0_9 = arith.constant 0 : index
    %c1 = arith.constant 1 : index
    %c0_10 = arith.constant 0 : index
    %14 = vector.load %arg2[%c0_9, %c1, %c0_10] : memref<8x8x256xf32, #tpu.memory_space<vmem>>, vector<8x1x256xf32>
    %15 = vector.shape_cast %14 : vector<8x1x256xf32> to vector<8x256xf32>
    %cst_11 = arith.constant 8.000000e-01 : f32
    %16 = vector.broadcast %cst_11 : f32 to vector<8x256xf32>
    %17 = arith.mulf %16, %15 : vector<8x256xf32>
    %cst_12 = arith.constant 1.000000e+00 : f32
    %cst_13 = arith.constant 8.000000e-01 : f32
    %18 = arith.subf %cst_12, %cst_13 : f32
    %19 = vector.broadcast %18 : f32 to vector<8x256xf32>
    %20 = arith.mulf %19, %10 : vector<8x256xf32>
    %21 = arith.addf %17, %20 : vector<8x256xf32>
    %c0_14 = arith.constant 0 : index
    %c1_15 = arith.constant 1 : index
    %c0_16 = arith.constant 0 : index
    %22 = vector.load %arg3[%c0_14, %c1_15, %c0_16] : memref<8x8x256xf32, #tpu.memory_space<vmem>>, vector<8x1x256xf32>
    %23 = vector.shape_cast %22 : vector<8x1x256xf32> to vector<8x256xf32>
    %24 = vector.shape_cast %21 : vector<8x256xf32> to vector<8x1x256xf32>
    tpu.vector_store %arg3[%c0_14, %c1_15, %c0_16], %24 {strides = array<i32>} : memref<8x8x256xf32, #tpu.memory_space<vmem>>, vector<8x1x256xf32>,
    %c0_17 = arith.constant 0 : index
    %c2 = arith.constant 2 : index
    %c0_18 = arith.constant 0 : index
    %25 = vector.load %arg2[%c0_17, %c2, %c0_18] : memref<8x8x256xf32, #tpu.memory_space<vmem>>, vector<8x1x256xf32>
    %26 = vector.shape_cast %25 : vector<8x1x256xf32> to vector<8x256xf32>
    %cst_19 = arith.constant 8.000000e-01 : f32
    %27 = vector.broadcast %cst_19 : f32 to vector<8x256xf32>
    %28 = arith.mulf %27, %26 : vector<8x256xf32>
    %cst_20 = arith.constant 1.000000e+00 : f32
    %cst_21 = arith.constant 8.000000e-01 : f32
    %29 = arith.subf %cst_20, %cst_21 : f32
    %30 = vector.broadcast %29 : f32 to vector<8x256xf32>
    %31 = arith.mulf %30, %21 : vector<8x256xf32>
    %32 = arith.addf %28, %31 : vector<8x256xf32>
    %c0_22 = arith.constant 0 : index
    %c2_23 = arith.constant 2 : index
    %c0_24 = arith.constant 0 : index
    %33 = vector.load %arg3[%c0_22, %c2_23, %c0_24] : memref<8x8x256xf32, #tpu.memory_space<vmem>>, vector<8x1x256xf32>
    %34 = vector.shape_cast %33 : vector<8x1x256xf32> to vector<8x256xf32>
    %35 = vector.shape_cast %32 : vector<8x256xf32> to vector<8x1x256xf32>
    tpu.vector_store %arg3[%c0_22, %c2_23, %c0_24], %35 {strides = array<i32>} : memref<8x8x256xf32, #tpu.memory_space<vmem>>, vector<8x1x256xf32>,
    %c0_25 = arith.constant 0 : index
    %c3 = arith.constant 3 : index
    %c0_26 = arith.constant 0 : index
    %36 = vector.load %arg2[%c0_25, %c3, %c0_26] : memref<8x8x256xf32, #tpu.memory_space<vmem>>, vector<8x1x256xf32>
    %37 = vector.shape_cast %36 : vector<8x1x256xf32> to vector<8x256xf32>
    %cst_27 = arith.constant 8.000000e-01 : f32
    %38 = vector.broadcast %cst_27 : f32 to vector<8x256xf32>
    %39 = arith.mulf %38, %37 : vector<8x256xf32>
    %cst_28 = arith.constant 1.000000e+00 : f32
    %cst_29 = arith.constant 8.000000e-01 : f32
    %40 = arith.subf %cst_28, %cst_29 : f32
    %41 = vector.broadcast %40 : f32 to vector<8x256xf32>
    %42 = arith.mulf %41, %32 : vector<8x256xf32>
    %43 = arith.addf %39, %42 : vector<8x256xf32>
    %c0_30 = arith.constant 0 : index
    %c3_31 = arith.constant 3 : index
    %c0_32 = arith.constant 0 : index
    %44 = vector.load %arg3[%c0_30, %c3_31, %c0_32] : memref<8x8x256xf32, #tpu.memory_space<vmem>>, vector<8x1x256xf32>
    %45 = vector.shape_cast %44 : vector<8x1x256xf32> to vector<8x256xf32>
    %46 = vector.shape_cast %43 : vector<8x256xf32> to vector<8x1x256xf32>
    tpu.vector_store %arg3[%c0_30, %c3_31, %c0_32], %46 {strides = array<i32>} : memref<8x8x256xf32, #tpu.memory_space<vmem>>, vector<8x1x256xf32>,
    %c0_33 = arith.constant 0 : index
    %c4 = arith.constant 4 : index
    %c0_34 = arith.constant 0 : index
    %47 = vector.load %arg2[%c0_33, %c4, %c0_34] : memref<8x8x256xf32, #tpu.memory_space<vmem>>, vector<8x1x256xf32>
    %48 = vector.shape_cast %47 : vector<8x1x256xf32> to vector<8x256xf32>
    %cst_35 = arith.constant 8.000000e-01 : f32
    %49 = vector.broadcast %cst_35 : f32 to vector<8x256xf32>
    %50 = arith.mulf %49, %48 : vector<8x256xf32>
    %cst_36 = arith.constant 1.000000e+00 : f32
    %cst_37 = arith.constant 8.000000e-01 : f32
    %51 = arith.subf %cst_36, %cst_37 : f32
    %52 = vector.broadcast %51 : f32 to vector<8x256xf32>
    %53 = arith.mulf %52, %43 : vector<8x256xf32>
    %54 = arith.addf %50, %53 : vector<8x256xf32>
    %c0_38 = arith.constant 0 : index
    %c4_39 = arith.constant 4 : index
    %c0_40 = arith.constant 0 : index
    %55 = vector.load %arg3[%c0_38, %c4_39, %c0_40] : memref<8x8x256xf32, #tpu.memory_space<vmem>>, vector<8x1x256xf32>
    %56 = vector.shape_cast %55 : vector<8x1x256xf32> to vector<8x256xf32>
    %57 = vector.shape_cast %54 : vector<8x256xf32> to vector<8x1x256xf32>
    tpu.vector_store %arg3[%c0_38, %c4_39, %c0_40], %57 {strides = array<i32>} : memref<8x8x256xf32, #tpu.memory_space<vmem>>, vector<8x1x256xf32>,
    %c0_41 = arith.constant 0 : index
    %c5 = arith.constant 5 : index
    %c0_42 = arith.constant 0 : index
    %58 = vector.load %arg2[%c0_41, %c5, %c0_42] : memref<8x8x256xf32, #tpu.memory_space<vmem>>, vector<8x1x256xf32>
    %59 = vector.shape_cast %58 : vector<8x1x256xf32> to vector<8x256xf32>
    %cst_43 = arith.constant 8.000000e-01 : f32
    %60 = vector.broadcast %cst_43 : f32 to vector<8x256xf32>
    %61 = arith.mulf %60, %59 : vector<8x256xf32>
    %cst_44 = arith.constant 1.000000e+00 : f32
    %cst_45 = arith.constant 8.000000e-01 : f32
    %62 = arith.subf %cst_44, %cst_45 : f32
    %63 = vector.broadcast %62 : f32 to vector<8x256xf32>
    %64 = arith.mulf %63, %54 : vector<8x256xf32>
    %65 = arith.addf %61, %64 : vector<8x256xf32>
    %c0_46 = arith.constant 0 : index
    %c5_47 = arith.constant 5 : index
    %c0_48 = arith.constant 0 : index
    %66 = vector.load %arg3[%c0_46, %c5_47, %c0_48] : memref<8x8x256xf32, #tpu.memory_space<vmem>>, vector<8x1x256xf32>
    %67 = vector.shape_cast %66 : vector<8x1x256xf32> to vector<8x256xf32>
    %68 = vector.shape_cast %65 : vector<8x256xf32> to vector<8x1x256xf32>
    tpu.vector_store %arg3[%c0_46, %c5_47, %c0_48], %68 {strides = array<i32>} : memref<8x8x256xf32, #tpu.memory_space<vmem>>, vector<8x1x256xf32>,
    %c0_49 = arith.constant 0 : index
    %c6 = arith.constant 6 : index
    %c0_50 = arith.constant 0 : index
    %69 = vector.load %arg2[%c0_49, %c6, %c0_50] : memref<8x8x256xf32, #tpu.memory_space<vmem>>, vector<8x1x256xf32>
    %70 = vector.shape_cast %69 : vector<8x1x256xf32> to vector<8x256xf32>
    %cst_51 = arith.constant 8.000000e-01 : f32
    %71 = vector.broadcast %cst_51 : f32 to vector<8x256xf32>
    %72 = arith.mulf %71, %70 : vector<8x256xf32>
    %cst_52 = arith.constant 1.000000e+00 : f32
    %cst_53 = arith.constant 8.000000e-01 : f32
    %73 = arith.subf %cst_52, %cst_53 : f32
    %74 = vector.broadcast %73 : f32 to vector<8x256xf32>
    %75 = arith.mulf %74, %65 : vector<8x256xf32>
    %76 = arith.addf %72, %75 : vector<8x256xf32>
    %c0_54 = arith.constant 0 : index
    %c6_55 = arith.constant 6 : index
    %c0_56 = arith.constant 0 : index
    %77 = vector.load %arg3[%c0_54, %c6_55, %c0_56] : memref<8x8x256xf32, #tpu.memory_space<vmem>>, vector<8x1x256xf32>
    %78 = vector.shape_cast %77 : vector<8x1x256xf32> to vector<8x256xf32>
    %79 = vector.shape_cast %76 : vector<8x256xf32> to vector<8x1x256xf32>
    tpu.vector_store %arg3[%c0_54, %c6_55, %c0_56], %79 {strides = array<i32>} : memref<8x8x256xf32, #tpu.memory_space<vmem>>, vector<8x1x256xf32>,
    %c0_57 = arith.constant 0 : index
    %c7 = arith.constant 7 : index
    %c0_58 = arith.constant 0 : index
    %80 = vector.load %arg2[%c0_57, %c7, %c0_58] : memref<8x8x256xf32, #tpu.memory_space<vmem>>, vector<8x1x256xf32>
    %81 = vector.shape_cast %80 : vector<8x1x256xf32> to vector<8x256xf32>
    %cst_59 = arith.constant 8.000000e-01 : f32
    %82 = vector.broadcast %cst_59 : f32 to vector<8x256xf32>
    %83 = arith.mulf %82, %81 : vector<8x256xf32>
    %cst_60 = arith.constant 1.000000e+00 : f32
    %cst_61 = arith.constant 8.000000e-01 : f32
    %84 = arith.subf %cst_60, %cst_61 : f32
    %85 = vector.broadcast %84 : f32 to vector<8x256xf32>
    %86 = arith.mulf %85, %76 : vector<8x256xf32>
    %87 = arith.addf %83, %86 : vector<8x256xf32>
    %c0_62 = arith.constant 0 : index
    %c7_63 = arith.constant 7 : index
    %c0_64 = arith.constant 0 : index
    %88 = vector.load %arg3[%c0_62, %c7_63, %c0_64] : memref<8x8x256xf32, #tpu.memory_space<vmem>>, vector<8x1x256xf32>
    %89 = vector.shape_cast %88 : vector<8x1x256xf32> to vector<8x256xf32>
    %90 = vector.shape_cast %87 : vector<8x256xf32> to vector<8x1x256xf32>
    tpu.vector_store %arg3[%c0_62, %c7_63, %c0_64], %90 {strides = array<i32>} : memref<8x8x256xf32, #tpu.memory_space<vmem>>, vector<8x1x256xf32>,
    %c0_65 = arith.constant 0 : index
    %c0_66 = arith.constant 0 : index
    %91 = vector.load %arg4[%c0_65, %c0_66] : memref<8x256xf32, #tpu.memory_space<vmem>>, vector<8x256xf32>
    tpu.vector_store %arg4[%c0_65, %c0_66], %87 {strides = array<i32>} : memref<8x256xf32, #tpu.memory_space<vmem>>, vector<8x256xf32>,
    return
  }
  func.func @transform_0(%arg0: i32, %arg1: i32) -> (i32, i32, i32) {
    %c0_i32 = arith.constant 0 : i32
    %c0_i32_0 = arith.constant 0 : i32
    return %arg0, %arg1, %c0_i32 : i32, i32, i32
  }
  func.func @transform_1(%arg0: i32, %arg1: i32) -> (i32, i32, i32) {
    %c0_i32 = arith.constant 0 : i32
    %c0_i32_0 = arith.constant 0 : i32
    return %arg0, %arg1, %c0_i32 : i32, i32, i32
  }
}

</mosaic_0001>

<bundles_post_ra>
// kernel: tpu_custom_call.1
= control target key start
LH: loop header
LB: loop body
LE: loop exit
PB: predicated region body
PF: predicated region fallthrough
CT: control target
= control target key end

     0   :  { %6 = vsyncpa [#allocation4], 0  ;;  %s928_s0 = inlined_call_operand.hbm [shape: f32[8,8,256], index: 0, kind: input, shape index: {}]   ;;  %s929_s1 = inlined_call_operand.hbm [shape: f32[8,8,256], index: 1, kind: output, shape index: {}]  }
   0x1   :  { %7 = vsyncpa [#allocation5], 0  ;;  %s752_s6 = smov [#allocation3]   ;;  %s704_s10 = scalar_lea.hbm %s928_s0, 2048 }
   0x2   :  { %s13_s7 = sshll.u32 %s752_s6, 4  ;;  %p705_p0 = scmp.ne.s32.totalorder %s928_s0, %s704_s10  ;;  %s14_s7 = int_to_ptr.vmem [resolvable:$true] %s13_s7 }
   0x3   :  { %p708_p1 = scmp.lt.u32.totalorder %s704_s10, %s928_s0 }
   0x5   :  { %p710_p2 = pnand %p708_p1, %p705_p0 }
   0x7   :  { %713 = shalt.err (!%p710_p2)
}
   0x8   :  { %s714_s15 = scalar_lea.vmem %s14_s7, 2048  ;;  %p719_p4 = scmp.lt.s32.totalorder %s14_s7, %s14_s7 }
   0x9   :  { %p715_p3 = scmp.ne.s32.totalorder %s14_s7, %s714_s15  ;;  %p720_p5 = scmp.lt.s32.totalorder %s714_s15, %s714_s15 }
   0xb   :  { %p721_p6 = por %p720_p5, %p719_p4 }
   0xd   :  { %p722_p7 = pnand %p721_p6, %p715_p3 }
   0xf   :  { %725 = shalt.err (!%p722_p7)
}
  0x10   :  { %s753_s16 = smov 256   ;;  %s754_s17 = smov 16  }
  0x11   :  { %19 = dma.hbm_to_vmem [thread:$0]  %s928_s0, 2048, %s14_s7, [#allocation4], %s753_s16, %s753_s16, %s754_s17  }
  0x12   :  { %748 = dma.done.wait [#allocation4], 2048  }
  0x13   :  { %749 = vsyncadd [#allocation4], 4294965248  ;;  %v130_v0 = vlaneseq  ;;  %v23_v2 = vld [vmem:[#allocation3] ss:$8 sm:$0x3]  ;;  %s755_s0 = smov [#allocation6]  }
  0x14   :  { %v25_v3 = vld [vmem:[#allocation3 + $0x10] ss:$8 sm:$0x3]  ;;  %v27_v4 = vld [vmem:[#allocation3 + $0x20] ss:$8 sm:$0x3] }
  0x15   :  { %vm781_vm0 = vcmp.lt.s32.totalorder %v130_v0, 256  ;;  %v29_v5 = vld [vmem:[#allocation3 + $0x30] ss:$8 sm:$0x3]  ;;  %v181_v6 = vmul.f32 0.19999999, %v23_v2 }
  0x16   :  { %134 = vst.msk [vmem:[#allocation6] ss:$8 sm:$0x3] %vm781_vm0, %v23_v2  ;;  %137 = vst.msk [vmem:[#allocation6 + $0x10] ss:$8 sm:$0x3] %vm781_vm0, %v25_v3 }
  0x17   :  { %140 = vst.msk [vmem:[#allocation6 + $0x20] ss:$8 sm:$0x3] %vm781_vm0, %v27_v4  ;;  %143 = vst.msk [vmem:[#allocation6 + $0x30] ss:$8 sm:$0x3] %vm781_vm0, %v29_v5 }
  0x18   :  { %v31_v7 = vld [vmem:[#allocation3 + $0x40] ss:$8 sm:$0x3]  ;;  %v33_v8 = vld [vmem:[#allocation3 + $0x50] ss:$8 sm:$0x3] }
  0x19   :  { %v182_v9 = vmul.f32 0.19999999, %v25_v3  ;;  %v183_v10 = vmul.f32 0.19999999, %v27_v4  ;;  %v184_v11 = vmul.f32 0.19999999, %v29_v5 }
  0x1a   :  { %146 = vst.msk [vmem:[#allocation6 + $0x40] ss:$8 sm:$0x3] %vm781_vm0, %v31_v7  ;;  %149 = vst.msk [vmem:[#allocation6 + $0x50] ss:$8 sm:$0x3] %vm781_vm0, %v33_v8 }
  0x1b   :  { %v35_v12 = vld [vmem:[#allocation3 + $0x60] ss:$8 sm:$0x3]  ;;  %v37_v13 = vld [vmem:[#allocation3 + $0x70] ss:$8 sm:$0x3] }
  0x1c   :  { %v185_v14 = vmul.f32 0.19999999, %v31_v7  ;;  %v186_v15 = vmul.f32 0.19999999, %v33_v8  ;;  %v187_v16 = vmul.f32 0.19999999, %v35_v12 }
  0x1d   :  { %152 = vst.msk [vmem:[#allocation6 + $0x60] ss:$8 sm:$0x3] %vm781_vm0, %v35_v12  ;;  %155 = vst.msk [vmem:[#allocation6 + $0x70] ss:$8 sm:$0x3] %vm781_vm0, %v37_v13 }
  0x1e   :  { %v158_v17 = vld [vmem:[#allocation3 + $0x1] ss:$8 sm:$0x3]  ;;  %v160_v18 = vld [vmem:[#allocation3 + $0x11] ss:$8 sm:$0x3] }
  0x1f   :  { %v188_v19 = vmul.f32 0.19999999, %v37_v13  ;;  %v173_v20 = vmul.f32 0.8, %v158_v17  ;;  %v174_v21 = vmul.f32 0.8, %v160_v18 }
  0x20   :  { %v162_v22 = vld [vmem:[#allocation3 + $0x21] ss:$8 sm:$0x3]  ;;  %v164_v23 = vld [vmem:[#allocation3 + $0x31] ss:$8 sm:$0x3] }
  0x21   :  { %v189_v24 = vadd.f32 %v181_v6, %v173_v20  ;;  %v190_v25 = vadd.f32 %v182_v9, %v174_v21  ;;  %v175_v26 = vmul.f32 0.8, %v162_v22  ;;  %v176_v27 = vmul.f32 0.8, %v164_v23  ;;  %s688_s20 = sshll.u32 %s755_s0, 4  ;;  %s689_s20 = int_to_ptr.vmem [resolvable:$true] %s688_s20 }
  0x22   :  { %v166_v28 = vld [vmem:[#allocation3 + $0x41] ss:$8 sm:$0x3]  ;;  %v168_v29 = vld [vmem:[#allocation3 + $0x51] ss:$8 sm:$0x3]  ;;  %p731_p9 = scmp.lt.s32.totalorder %s689_s20, %s689_s20 }
  0x23   :  { %198 = vst.msk [vmem:[#allocation6 + $0x1] ss:$8 sm:$0x3] %vm781_vm0, %v189_v24  ;;  %201 = vst.msk [vmem:[#allocation6 + $0x11] ss:$8 sm:$0x3] %vm781_vm0, %v190_v25  ;;  %v191_v30 = vadd.f32 %v183_v10, %v175_v26  ;;  %v192_v31 = vadd.f32 %v184_v11, %v176_v27 }
  0x24   :  { %v177_v32 = vmul.f32 0.8, %v166_v28  ;;  %v178_v33 = vmul.f32 0.8, %v168_v29  ;;  %v245_v41 = vmul.f32 0.19999999, %v189_v24 }
  0x25   :  { %v170_v34 = vld [vmem:[#allocation3 + $0x61] ss:$8 sm:$0x3]  ;;  %v172_v35 = vld [vmem:[#allocation3 + $0x71] ss:$8 sm:$0x3] }
  0x26   :  { %204 = vst.msk [vmem:[#allocation6 + $0x21] ss:$8 sm:$0x3] %vm781_vm0, %v191_v30  ;;  %207 = vst.msk [vmem:[#allocation6 + $0x31] ss:$8 sm:$0x3] %vm781_vm0, %v192_v31  ;;  %v193_v36 = vadd.f32 %v185_v14, %v177_v32  ;;  %v194_v37 = vadd.f32 %v186_v15, %v178_v33 }
  0x27   :  { %v179_v38 = vmul.f32 0.8, %v170_v34  ;;  %v180_v39 = vmul.f32 0.8, %v172_v35  ;;  %v246_v47 = vmul.f32 0.19999999, %v190_v25 }
  0x28   :  { %v222_v40 = vld [vmem:[#allocation3 + $0x2] ss:$8 sm:$0x3]  ;;  %210 = vst.msk [vmem:[#allocation6 + $0x41] ss:$8 sm:$0x3] %vm781_vm0, %v193_v36 }
  0x29   :  { %213 = vst.msk [vmem:[#allocation6 + $0x51] ss:$8 sm:$0x3] %vm781_vm0, %v194_v37  ;;  %v195_v42 = vadd.f32 %v187_v16, %v179_v38  ;;  %v196_v43 = vadd.f32 %v188_v19, %v180_v39  ;;  %v237_v44 = vmul.f32 0.8, %v222_v40  ;;  %s726_s21 = scalar_lea.vmem %s689_s20, 2048 }
  0x2a   :  { %v224_v45 = vld [vmem:[#allocation3 + $0x12] ss:$8 sm:$0x3]  ;;  %v247_v48 = vmul.f32 0.19999999, %v191_v30  ;;  %p727_p8 = scmp.ne.s32.totalorder %s689_s20, %s726_s21  ;;  %p732_p10 = scmp.lt.s32.totalorder %s726_s21, %s726_s21 }
  0x2b   :  { %v238_v46 = vmul.f32 0.8, %v224_v45  ;;  %216 = vst.msk [vmem:[#allocation6 + $0x61] ss:$8 sm:$0x3] %vm781_vm0, %v195_v42  ;;  %v253_v49 = vadd.f32 %v245_v41, %v237_v44 }
  0x2c   :  { %219 = vst.msk [vmem:[#allocation6 + $0x71] ss:$8 sm:$0x3] %vm781_vm0, %v196_v43  ;;  %v226_v50 = vld [vmem:[#allocation3 + $0x22] ss:$8 sm:$0x3]  ;;  %p733_p11 = por %p732_p10, %p731_p9 }
  0x2d   :  { %v228_v51 = vld [vmem:[#allocation3 + $0x32] ss:$8 sm:$0x3]  ;;  %v254_v52 = vadd.f32 %v246_v47, %v238_v46  ;;  %v239_v53 = vmul.f32 0.8, %v226_v50 }
  0x2e   :  { %v240_v54 = vmul.f32 0.8, %v228_v51  ;;  %v248_v55 = vmul.f32 0.19999999, %v192_v31  ;;  %v249_v57 = vmul.f32 0.19999999, %v193_v36  ;;  %p734_p12 = pnand %p733_p11, %p727_p8 }
  0x2f   :  { %262 = vst.msk [vmem:[#allocation6 + $0x2] ss:$8 sm:$0x3] %vm781_vm0, %v253_v49  ;;  %v230_v56 = vld [vmem:[#allocation3 + $0x42] ss:$8 sm:$0x3]  ;;  %v255_v58 = vadd.f32 %v247_v48, %v239_v53 }
  0x30   :  { %265 = vst.msk [vmem:[#allocation6 + $0x12] ss:$8 sm:$0x3] %vm781_vm0, %v254_v52  ;;  %v256_v59 = vadd.f32 %v248_v55, %v240_v54  ;;  %v241_v60 = vmul.f32 0.8, %v230_v56 }
  0x31   :  { %v232_v61 = vld [vmem:[#allocation3 + $0x52] ss:$8 sm:$0x3]  ;;  %v250_v63 = vmul.f32 0.19999999, %v194_v37 }
  0x32   :  { %v242_v62 = vmul.f32 0.8, %v232_v61  ;;  %v251_v0 = vmul.f32 0.19999999, %v195_v42  ;;  %v257_v2 = vadd.f32 %v249_v57, %v241_v60  ;;  %v252_v8 = vmul.f32 0.19999999, %v196_v43 }
  0x33   :  { %268 = vst.msk [vmem:[#allocation6 + $0x22] ss:$8 sm:$0x3] %vm781_vm0, %v255_v58  ;;  %271 = vst.msk [vmem:[#allocation6 + $0x32] ss:$8 sm:$0x3] %vm781_vm0, %v256_v59 }
  0x34   :  { %v234_v3 = vld [vmem:[#allocation3 + $0x62] ss:$8 sm:$0x3]  ;;  %v236_v4 = vld [vmem:[#allocation3 + $0x72] ss:$8 sm:$0x3]  ;;  %v258_v5 = vadd.f32 %v250_v63, %v242_v62 }
  0x35   :  { %v243_v6 = vmul.f32 0.8, %v234_v3  ;;  %v244_v7 = vmul.f32 0.8, %v236_v4  ;;  %v309_v10 = vmul.f32 0.19999999, %v253_v49 }
  0x36   :  { %274 = vst.msk [vmem:[#allocation6 + $0x42] ss:$8 sm:$0x3] %vm781_vm0, %v257_v2  ;;  %v286_v9 = vld [vmem:[#allocation3 + $0x3] ss:$8 sm:$0x3] }
  0x37   :  { %277 = vst.msk [vmem:[#allocation6 + $0x52] ss:$8 sm:$0x3] %vm781_vm0, %v258_v5  ;;  %v259_v11 = vadd.f32 %v251_v0, %v243_v6  ;;  %v260_v12 = vadd.f32 %v252_v8, %v244_v7  ;;  %v301_v13 = vmul.f32 0.8, %v286_v9 }
  0x38   :  { %v288_v14 = vld [vmem:[#allocation3 + $0x13] ss:$8 sm:$0x3]  ;;  %v310_v16 = vmul.f32 0.19999999, %v254_v52 }
  0x39   :  { %v302_v15 = vmul.f32 0.8, %v288_v14  ;;  %v311_v17 = vmul.f32 0.19999999, %v255_v58  ;;  %v317_v18 = vadd.f32 %v309_v10, %v301_v13  ;;  %v312_v24 = vmul.f32 0.19999999, %v256_v59 }
  0x3a   :  { %280 = vst.msk [vmem:[#allocation6 + $0x62] ss:$8 sm:$0x3] %vm781_vm0, %v259_v11  ;;  %283 = vst.msk [vmem:[#allocation6 + $0x72] ss:$8 sm:$0x3] %vm781_vm0, %v260_v12 }
  0x3b   :  { %v290_v19 = vld [vmem:[#allocation3 + $0x23] ss:$8 sm:$0x3]  ;;  %v292_v20 = vld [vmem:[#allocation3 + $0x33] ss:$8 sm:$0x3]  ;;  %v318_v21 = vadd.f32 %v310_v16, %v302_v15 }
  0x3c   :  { %v303_v22 = vmul.f32 0.8, %v290_v19  ;;  %v304_v23 = vmul.f32 0.8, %v292_v20  ;;  %v313_v26 = vmul.f32 0.19999999, %v257_v2 }
  0x3d   :  { %326 = vst.msk [vmem:[#allocation6 + $0x3] ss:$8 sm:$0x3] %vm781_vm0, %v317_v18  ;;  %v294_v25 = vld [vmem:[#allocation3 + $0x43] ss:$8 sm:$0x3] }
  0x3e   :  { %329 = vst.msk [vmem:[#allocation6 + $0x13] ss:$8 sm:$0x3] %vm781_vm0, %v318_v21  ;;  %v319_v27 = vadd.f32 %v311_v17, %v303_v22  ;;  %v320_v28 = vadd.f32 %v312_v24, %v304_v23  ;;  %v305_v29 = vmul.f32 0.8, %v294_v25 }
  0x3f   :  { %v296_v30 = vld [vmem:[#allocation3 + $0x53] ss:$8 sm:$0x3]  ;;  %v314_v32 = vmul.f32 0.19999999, %v258_v5 }
  0x40   :  { %v306_v31 = vmul.f32 0.8, %v296_v30  ;;  %v315_v33 = vmul.f32 0.19999999, %v259_v11  ;;  %v321_v34 = vadd.f32 %v313_v26, %v305_v29  ;;  %v316_v40 = vmul.f32 0.19999999, %v260_v12 }
  0x41   :  { %332 = vst.msk [vmem:[#allocation6 + $0x23] ss:$8 sm:$0x3] %vm781_vm0, %v319_v27  ;;  %335 = vst.msk [vmem:[#allocation6 + $0x33] ss:$8 sm:$0x3] %vm781_vm0, %v320_v28 }
  0x42   :  { %v298_v35 = vld [vmem:[#allocation3 + $0x63] ss:$8 sm:$0x3]  ;;  %v300_v36 = vld [vmem:[#allocation3 + $0x73] ss:$8 sm:$0x3]  ;;  %v322_v37 = vadd.f32 %v314_v32, %v306_v31 }
  0x43   :  { %v307_v38 = vmul.f32 0.8, %v298_v35  ;;  %v308_v39 = vmul.f32 0.8, %v300_v36  ;;  %v373_v42 = vmul.f32 0.19999999, %v317_v18 }
  0x44   :  { %338 = vst.msk [vmem:[#allocation6 + $0x43] ss:$8 sm:$0x3] %vm781_vm0, %v321_v34  ;;  %v350_v41 = vld [vmem:[#allocation3 + $0x4] ss:$8 sm:$0x3] }
  0x45   :  { %341 = vst.msk [vmem:[#allocation6 + $0x53] ss:$8 sm:$0x3] %vm781_vm0, %v322_v37  ;;  %v323_v43 = vadd.f32 %v315_v33, %v307_v38  ;;  %v324_v44 = vadd.f32 %v316_v40, %v308_v39  ;;  %v365_v45 = vmul.f32 0.8, %v350_v41 }
  0x46   :  { %v352_v46 = vld [vmem:[#allocation3 + $0x14] ss:$8 sm:$0x3]  ;;  %v374_v48 = vmul.f32 0.19999999, %v318_v21 }
  0x47   :  { %v366_v47 = vmul.f32 0.8, %v352_v46  ;;  %v375_v49 = vmul.f32 0.19999999, %v319_v27  ;;  %v381_v50 = vadd.f32 %v373_v42, %v365_v45  ;;  %v376_v56 = vmul.f32 0.19999999, %v320_v28 }
  0x48   :  { %344 = vst.msk [vmem:[#allocation6 + $0x63] ss:$8 sm:$0x3] %vm781_vm0, %v323_v43  ;;  %347 = vst.msk [vmem:[#allocation6 + $0x73] ss:$8 sm:$0x3] %vm781_vm0, %v324_v44 }
  0x49   :  { %v354_v51 = vld [vmem:[#allocation3 + $0x24] ss:$8 sm:$0x3]  ;;  %v356_v52 = vld [vmem:[#allocation3 + $0x34] ss:$8 sm:$0x3]  ;;  %v382_v53 = vadd.f32 %v374_v48, %v366_v47 }
  0x4a   :  { %v367_v54 = vmul.f32 0.8, %v354_v51  ;;  %v368_v55 = vmul.f32 0.8, %v356_v52  ;;  %v377_v58 = vmul.f32 0.19999999, %v321_v34 }
  0x4b   :  { %390 = vst.msk [vmem:[#allocation6 + $0x4] ss:$8 sm:$0x3] %vm781_vm0, %v381_v50  ;;  %v358_v57 = vld [vmem:[#allocation3 + $0x44] ss:$8 sm:$0x3] }
  0x4c   :  { %393 = vst.msk [vmem:[#allocation6 + $0x14] ss:$8 sm:$0x3] %vm781_vm0, %v382_v53  ;;  %v383_v59 = vadd.f32 %v375_v49, %v367_v54  ;;  %v384_v60 = vadd.f32 %v376_v56, %v368_v55  ;;  %v369_v61 = vmul.f32 0.8, %v358_v57 }
  0x4d   :  { %v360_v62 = vld [vmem:[#allocation3 + $0x54] ss:$8 sm:$0x3]  ;;  %v378_v0 = vmul.f32 0.19999999, %v322_v37 }
  0x4e   :  { %v370_v63 = vmul.f32 0.8, %v360_v62  ;;  %v379_v2 = vmul.f32 0.19999999, %v323_v43  ;;  %v385_v3 = vadd.f32 %v377_v58, %v369_v61  ;;  %v380_v9 = vmul.f32 0.19999999, %v324_v44 }
  0x4f   :  { %396 = vst.msk [vmem:[#allocation6 + $0x24] ss:$8 sm:$0x3] %vm781_vm0, %v383_v59  ;;  %399 = vst.msk [vmem:[#allocation6 + $0x34] ss:$8 sm:$0x3] %vm781_vm0, %v384_v60 }
  0x50   :  { %v362_v4 = vld [vmem:[#allocation3 + $0x64] ss:$8 sm:$0x3]  ;;  %v364_v5 = vld [vmem:[#allocation3 + $0x74] ss:$8 sm:$0x3]  ;;  %v386_v6 = vadd.f32 %v378_v0, %v370_v63 }
  0x51   :  { %v371_v7 = vmul.f32 0.8, %v362_v4  ;;  %v372_v8 = vmul.f32 0.8, %v364_v5  ;;  %v437_v11 = vmul.f32 0.19999999, %v381_v50 }
  0x52   :  { %402 = vst.msk [vmem:[#allocation6 + $0x44] ss:$8 sm:$0x3] %vm781_vm0, %v385_v3  ;;  %v414_v10 = vld [vmem:[#allocation3 + $0x5] ss:$8 sm:$0x3] }
  0x53   :  { %405 = vst.msk [vmem:[#allocation6 + $0x54] ss:$8 sm:$0x3] %vm781_vm0, %v386_v6  ;;  %v387_v12 = vadd.f32 %v379_v2, %v371_v7  ;;  %v388_v13 = vadd.f32 %v380_v9, %v372_v8  ;;  %v429_v14 = vmul.f32 0.8, %v414_v10 }
  0x54   :  { %v416_v15 = vld [vmem:[#allocation3 + $0x15] ss:$8 sm:$0x3]  ;;  %v438_v17 = vmul.f32 0.19999999, %v382_v53 }
  0x55   :  { %v430_v16 = vmul.f32 0.8, %v416_v15  ;;  %v439_v18 = vmul.f32 0.19999999, %v383_v59  ;;  %v445_v19 = vadd.f32 %v437_v11, %v429_v14  ;;  %v440_v25 = vmul.f32 0.19999999, %v384_v60 }
  0x56   :  { %408 = vst.msk [vmem:[#allocation6 + $0x64] ss:$8 sm:$0x3] %vm781_vm0, %v387_v12  ;;  %411 = vst.msk [vmem:[#allocation6 + $0x74] ss:$8 sm:$0x3] %vm781_vm0, %v388_v13 }
  0x57   :  { %v418_v20 = vld [vmem:[#allocation3 + $0x25] ss:$8 sm:$0x3]  ;;  %v420_v21 = vld [vmem:[#allocation3 + $0x35] ss:$8 sm:$0x3]  ;;  %v446_v22 = vadd.f32 %v438_v17, %v430_v16 }
  0x58   :  { %v431_v23 = vmul.f32 0.8, %v418_v20  ;;  %v432_v24 = vmul.f32 0.8, %v420_v21  ;;  %v441_v27 = vmul.f32 0.19999999, %v385_v3 }
  0x59   :  { %454 = vst.msk [vmem:[#allocation6 + $0x5] ss:$8 sm:$0x3] %vm781_vm0, %v445_v19  ;;  %v422_v26 = vld [vmem:[#allocation3 + $0x45] ss:$8 sm:$0x3] }
  0x5a   :  { %457 = vst.msk [vmem:[#allocation6 + $0x15] ss:$8 sm:$0x3] %vm781_vm0, %v446_v22  ;;  %v447_v28 = vadd.f32 %v439_v18, %v431_v23  ;;  %v448_v29 = vadd.f32 %v440_v25, %v432_v24  ;;  %v433_v30 = vmul.f32 0.8, %v422_v26 }
  0x5b   :  { %v424_v31 = vld [vmem:[#allocation3 + $0x55] ss:$8 sm:$0x3]  ;;  %v442_v33 = vmul.f32 0.19999999, %v386_v6 }
  0x5c   :  { %v434_v32 = vmul.f32 0.8, %v424_v31  ;;  %v443_v34 = vmul.f32 0.19999999, %v387_v12  ;;  %v449_v35 = vadd.f32 %v441_v27, %v433_v30  ;;  %v444_v41 = vmul.f32 0.19999999, %v388_v13 }
  0x5d   :  { %460 = vst.msk [vmem:[#allocation6 + $0x25] ss:$8 sm:$0x3] %vm781_vm0, %v447_v28  ;;  %463 = vst.msk [vmem:[#allocation6 + $0x35] ss:$8 sm:$0x3] %vm781_vm0, %v448_v29 }
  0x5e   :  { %v426_v36 = vld [vmem:[#allocation3 + $0x65] ss:$8 sm:$0x3]  ;;  %v428_v37 = vld [vmem:[#allocation3 + $0x75] ss:$8 sm:$0x3]  ;;  %v450_v38 = vadd.f32 %v442_v33, %v434_v32 }
  0x5f   :  { %v435_v39 = vmul.f32 0.8, %v426_v36  ;;  %v436_v40 = vmul.f32 0.8, %v428_v37  ;;  %v501_v43 = vmul.f32 0.19999999, %v445_v19 }
  0x60   :  { %466 = vst.msk [vmem:[#allocation6 + $0x45] ss:$8 sm:$0x3] %vm781_vm0, %v449_v35  ;;  %v478_v42 = vld [vmem:[#allocation3 + $0x6] ss:$8 sm:$0x3] }
  0x61   :  { %469 = vst.msk [vmem:[#allocation6 + $0x55] ss:$8 sm:$0x3] %vm781_vm0, %v450_v38  ;;  %v451_v44 = vadd.f32 %v443_v34, %v435_v39  ;;  %v452_v45 = vadd.f32 %v444_v41, %v436_v40  ;;  %v493_v46 = vmul.f32 0.8, %v478_v42 }
  0x62   :  { %v480_v47 = vld [vmem:[#allocation3 + $0x16] ss:$8 sm:$0x3]  ;;  %v502_v49 = vmul.f32 0.19999999, %v446_v22 }
  0x63   :  { %v494_v48 = vmul.f32 0.8, %v480_v47  ;;  %v503_v50 = vmul.f32 0.19999999, %v447_v28  ;;  %v509_v51 = vadd.f32 %v501_v43, %v493_v46  ;;  %v504_v57 = vmul.f32 0.19999999, %v448_v29 }
  0x64   :  { %472 = vst.msk [vmem:[#allocation6 + $0x65] ss:$8 sm:$0x3] %vm781_vm0, %v451_v44  ;;  %475 = vst.msk [vmem:[#allocation6 + $0x75] ss:$8 sm:$0x3] %vm781_vm0, %v452_v45 }
  0x65   :  { %v482_v52 = vld [vmem:[#allocation3 + $0x26] ss:$8 sm:$0x3]  ;;  %v484_v53 = vld [vmem:[#allocation3 + $0x36] ss:$8 sm:$0x3]  ;;  %v510_v54 = vadd.f32 %v502_v49, %v494_v48 }
  0x66   :  { %v495_v55 = vmul.f32 0.8, %v482_v52  ;;  %v496_v56 = vmul.f32 0.8, %v484_v53  ;;  %v505_v59 = vmul.f32 0.19999999, %v449_v35 }
  0x67   :  { %518 = vst.msk [vmem:[#allocation6 + $0x6] ss:$8 sm:$0x3] %vm781_vm0, %v509_v51  ;;  %v486_v58 = vld [vmem:[#allocation3 + $0x46] ss:$8 sm:$0x3] }
  0x68   :  { %521 = vst.msk [vmem:[#allocation6 + $0x16] ss:$8 sm:$0x3] %vm781_vm0, %v510_v54  ;;  %v511_v60 = vadd.f32 %v503_v50, %v495_v55  ;;  %v512_v61 = vadd.f32 %v504_v57, %v496_v56  ;;  %v497_v62 = vmul.f32 0.8, %v486_v58 }
  0x69   :  { %v488_v63 = vld [vmem:[#allocation3 + $0x56] ss:$8 sm:$0x3]  ;;  %v506_v2 = vmul.f32 0.19999999, %v450_v38 }
  0x6a   :  { %v498_v0 = vmul.f32 0.8, %v488_v63  ;;  %v507_v3 = vmul.f32 0.19999999, %v451_v44  ;;  %v513_v4 = vadd.f32 %v505_v59, %v497_v62  ;;  %v508_v10 = vmul.f32 0.19999999, %v452_v45 }
  0x6b   :  { %524 = vst.msk [vmem:[#allocation6 + $0x26] ss:$8 sm:$0x3] %vm781_vm0, %v511_v60  ;;  %527 = vst.msk [vmem:[#allocation6 + $0x36] ss:$8 sm:$0x3] %vm781_vm0, %v512_v61 }
  0x6c   :  { %v490_v5 = vld [vmem:[#allocation3 + $0x66] ss:$8 sm:$0x3]  ;;  %v492_v6 = vld [vmem:[#allocation3 + $0x76] ss:$8 sm:$0x3]  ;;  %v514_v7 = vadd.f32 %v506_v2, %v498_v0 }
  0x6d   :  { %v499_v8 = vmul.f32 0.8, %v490_v5  ;;  %v500_v9 = vmul.f32 0.8, %v492_v6  ;;  %v565_v12 = vmul.f32 0.19999999, %v509_v51 }
  0x6e   :  { %530 = vst.msk [vmem:[#allocation6 + $0x46] ss:$8 sm:$0x3] %vm781_vm0, %v513_v4  ;;  %v542_v11 = vld [vmem:[#allocation3 + $0x7] ss:$8 sm:$0x3] }
  0x6f   :  { %533 = vst.msk [vmem:[#allocation6 + $0x56] ss:$8 sm:$0x3] %vm781_vm0, %v514_v7  ;;  %v515_v13 = vadd.f32 %v507_v3, %v499_v8  ;;  %v516_v14 = vadd.f32 %v508_v10, %v500_v9  ;;  %v557_v15 = vmul.f32 0.8, %v542_v11 }
  0x70   :  { %v544_v16 = vld [vmem:[#allocation3 + $0x17] ss:$8 sm:$0x3]  ;;  %v566_v18 = vmul.f32 0.19999999, %v510_v54 }
  0x71   :  { %v558_v17 = vmul.f32 0.8, %v544_v16  ;;  %v567_v19 = vmul.f32 0.19999999, %v511_v60  ;;  %v573_v20 = vadd.f32 %v565_v12, %v557_v15  ;;  %v568_v26 = vmul.f32 0.19999999, %v512_v61 }
  0x72   :  { %536 = vst.msk [vmem:[#allocation6 + $0x66] ss:$8 sm:$0x3] %vm781_vm0, %v515_v13  ;;  %539 = vst.msk [vmem:[#allocation6 + $0x76] ss:$8 sm:$0x3] %vm781_vm0, %v516_v14 }
  0x73   :  { %v546_v21 = vld [vmem:[#allocation3 + $0x27] ss:$8 sm:$0x3]  ;;  %v548_v22 = vld [vmem:[#allocation3 + $0x37] ss:$8 sm:$0x3]  ;;  %v574_v23 = vadd.f32 %v566_v18, %v558_v17 }
  0x74   :  { %v559_v24 = vmul.f32 0.8, %v546_v21  ;;  %v560_v25 = vmul.f32 0.8, %v548_v22  ;;  %v569_v28 = vmul.f32 0.19999999, %v513_v4 }
  0x75   :  { %582 = vst.msk [vmem:[#allocation6 + $0x7] ss:$8 sm:$0x3] %vm781_vm0, %v573_v20  ;;  %v550_v27 = vld [vmem:[#allocation3 + $0x47] ss:$8 sm:$0x3] }
  0x76   :  { %585 = vst.msk [vmem:[#allocation6 + $0x17] ss:$8 sm:$0x3] %vm781_vm0, %v574_v23  ;;  %v575_v29 = vadd.f32 %v567_v19, %v559_v24  ;;  %v576_v30 = vadd.f32 %v568_v26, %v560_v25  ;;  %v561_v31 = vmul.f32 0.8, %v550_v27 }
  0x77   :  { %v552_v32 = vld [vmem:[#allocation3 + $0x57] ss:$8 sm:$0x3]  ;;  %v570_v34 = vmul.f32 0.19999999, %v514_v7 }
  0x78   :  { %v562_v33 = vmul.f32 0.8, %v552_v32  ;;  %v571_v35 = vmul.f32 0.19999999, %v515_v13  ;;  %v577_v36 = vadd.f32 %v569_v28, %v561_v31  ;;  %v572_v42 = vmul.f32 0.19999999, %v516_v14 }
  0x79   :  { %588 = vst.msk [vmem:[#allocation6 + $0x27] ss:$8 sm:$0x3] %vm781_vm0, %v575_v29  ;;  %591 = vst.msk [vmem:[#allocation6 + $0x37] ss:$8 sm:$0x3] %vm781_vm0, %v576_v30 }
  0x7a   :  { %v554_v37 = vld [vmem:[#allocation3 + $0x67] ss:$8 sm:$0x3]  ;;  %v556_v38 = vld [vmem:[#allocation3 + $0x77] ss:$8 sm:$0x3]  ;;  %v578_v39 = vadd.f32 %v570_v34, %v562_v33 }
  0x7b   :  { %v563_v40 = vmul.f32 0.8, %v554_v37  ;;  %v564_v41 = vmul.f32 0.8, %v556_v38 }
  0x7c   :  { %594 = vst.msk [vmem:[#allocation6 + $0x47] ss:$8 sm:$0x3] %vm781_vm0, %v577_v36  ;;  %597 = vst.msk [vmem:[#allocation6 + $0x57] ss:$8 sm:$0x3] %vm781_vm0, %v578_v39 }
  0x7d   :  { %v579_v43 = vadd.f32 %v571_v35, %v563_v40  ;;  %v580_v44 = vadd.f32 %v572_v42, %v564_v41 }
  0x7f   :  { %600 = vst.msk [vmem:[#allocation6 + $0x67] ss:$8 sm:$0x3] %vm781_vm0, %v579_v43  ;;  %603 = vst.msk [vmem:[#allocation6 + $0x77] ss:$8 sm:$0x3] %vm781_vm0, %v580_v44 }
  0x80   :  { %737 = shalt.err (!%p734_p12)
}
  0x81   :  { %s738_s24 = scalar_lea.hbm %s929_s1, 2048 }
  0x82   :  { %p739_p13 = scmp.ne.s32.totalorder %s929_s1, %s738_s24  ;;  %p742_p0 = scmp.lt.u32.totalorder %s738_s24, %s929_s1 }
  0x84   :  { %p744_p1 = pnand %p742_p0, %p739_p13 }
  0x86   :  { %747 = shalt.err (!%p744_p1)
}
  0x87   :  { %694 = dma.vmem_to_hbm [thread:$0]  %s689_s20, 2048, %s929_s1, [#allocation5], %s753_s16, %s753_s16, %s754_s17  }
  0x88   :  { %750 = dma.done.wait [#allocation5], 2048  }
  0x89   :  { %751 = vsyncadd [#allocation5], 4294965248 }
  0x8a   :  { %698 = vsyncpa [#allocation4], 1 }
  0x8b   :  { %699 = vsyncpa [#allocation5], 1 }

</bundles_post_ra>
